<compile_context>
chip_gen: v7x
topology: tpu7x:2x2x1
jax: 0.10.0
libtpu: 0.0.40
codegen_flags: <defaults>
</compile_context>

<pallas_src>
import functools

import jax
import jax.numpy as jnp
from jax import lax
from jax.experimental import pallas as pl
from jax.experimental.pallas import tpu as pltpu


def _layer_norm(x, w, b, eps=1e-5):
    mean = jnp.mean(x, axis=-1, keepdims=True)
    var = jnp.mean((x - mean) ** 2, axis=-1, keepdims=True)
    return (x - mean) * lax.rsqrt(var + eps) * w + b


# --------------------------------------------------------------------------
# Stage 1: K^T / V projection, once per batch element.
#   K^T stored (D, Tk) bf16 (pre-transposed), V stored (Tk, D) bf16.
# --------------------------------------------------------------------------
def kv_proj_kernel(enc_ref, ln_w_ref, ln_b_ref, wkv_ref, bkv_ref, kt_ref, v_ref):
    f32, bf16 = jnp.float32, jnp.bfloat16
    d_model = wkv_ref.shape[0]

    enc = enc_ref[...].astype(f32)                                    # (Tk, D)
    enc_n = _layer_norm(enc, ln_w_ref[...], ln_b_ref[...])
    kv = jnp.dot(enc_n.astype(bf16), wkv_ref[...],
                 preferred_element_type=f32) + bkv_ref[...]           # (Tk, 2D) f32
    # One transpose per batch element (amortized over all Tq tiles of stage 2).
    kt_ref[...] = jnp.transpose(kv[:, :d_model]).astype(bf16)         # (D, Tk)
    v_ref[...] = kv[:, d_model:].astype(bf16)                         # (Tk, D)


# --------------------------------------------------------------------------
# Stage 2: cross-attention + FFN over a (batch, Tq-tile) grid.
# --------------------------------------------------------------------------
def decoder_layer_kernel(
    seqs_ref, kt_ref, v_ref,
    wq_ref, bq_ref, wo_ref, bo_ref,
    ln_ffn_w_ref, ln_ffn_b_ref,
    w1_ref, b1_ref, w2_ref, b2_ref,
    out_ref,
    ctx_scr,                       # (tq, D) bf16 staging buffer for head contexts
    *, num_heads,
):
    f32, bf16 = jnp.float32, jnp.bfloat16
    d_model = wq_ref.shape[0]
    d_head = d_model // num_heads
    n_fc = w1_ref.shape[0]                      # w1 passed as (n_chunks, D, fc)
    scale = 1.0 / (d_head ** 0.5)

    # ---------------- cross-attention sub-layer ----------------
    seqs = seqs_ref[...].astype(f32)                                   # (tq, D)
    residual = seqs

    q = jnp.dot(seqs.astype(bf16), wq_ref[...],
                preferred_element_type=f32) + bq_ref[...]
    q = (q * scale).astype(bf16)                                       # fold 1/sqrt(dh)

    for h in range(num_heads):
        qh = q[:, h * d_head:(h + 1) * d_head]                         # (tq, dh) bf16
        kth = kt_ref[h * d_head:(h + 1) * d_head, :]                   # (dh, Tk) bf16
        s = jnp.dot(qh, kth, preferred_element_type=f32)               # (tq, Tk) f32
        s = s - jnp.max(s, axis=-1, keepdims=True)
        p = jnp.exp(s)
        p = p * pl.reciprocal(jnp.sum(p, axis=-1, keepdims=True), approx=True)
        vh = v_ref[:, h * d_head:(h + 1) * d_head]                     # (Tk, dh) bf16
        ctx = jnp.dot(p.astype(bf16), vh, preferred_element_type=f32)  # (tq, dh)
        ctx_scr[:, h * d_head:(h + 1) * d_head] = ctx.astype(bf16)

    # Single full-width O-projection: full MXU contraction (K = D).
    attn = jnp.dot(ctx_scr[...], wo_ref[...], preferred_element_type=f32)
    seqs = attn + bo_ref[...] + residual

    # ---------------- feed-forward sub-layer ----------------
    residual = seqs
    x = _layer_norm(seqs, ln_ffn_w_ref[...], ln_ffn_b_ref[...]).astype(bf16)
    acc = jnp.zeros(seqs.shape, f32)
    for c in range(n_fc):
        h1 = jnp.dot(x, w1_ref[c], preferred_element_type=f32) + b1_ref[c]
        h1 = jax.nn.gelu(h1, approximate=False)     # PyTorch nn.GELU default (erf)
        acc = acc + jnp.dot(h1.astype(bf16), w2_ref[c],
                            preferred_element_type=f32)

    out_ref[...] = (acc + b2_ref[...] + residual).astype(out_ref.dtype)


def cross_attention_decoder_layer(seqs, encoder_output, params, *, num_heads):
    B, Tq, D = seqs.shape
    _, Tk, _ = encoder_output.shape
    assert D % num_heads == 0, "model dim must be divisible by num_heads"
    F = params["w1"].shape[1]
    f32, bf16 = jnp.float32, jnp.bfloat16

    def pick_tile(n, candidates):
        for c in candidates:
            if n >= c and n % c == 0:
                return c
        return n

    tq_tile = Tq if Tq <= 256 else pick_tile(Tq, (256, 128, 64, 32, 16, 8))
    n_tq = Tq // tq_tile
    f_chunk = F if F <= 512 else pick_tile(F, (512, 256, 128))
    n_fc = F // f_chunk

    # ---- one-time parameter packing / casting (outside the kernels) ----
    ln_ca_w = params["ln_ca_w"].astype(f32)
    ln_ca_b = params["ln_ca_b"].astype(f32)
    wkv = jnp.concatenate([params["wk"], params["wv"]], axis=1).astype(bf16)   # (D, 2D)
    bkv = jnp.concatenate([params["bk"], params["bv"]], axis=1).astype(f32)    # (1, 2D)
    wq = params["wq"].astype(bf16)                                             # (D, D)
    bq = params["bq"].astype(f32)
    wo = params["wo"].astype(bf16)                                             # (D, D)
    bo = params["bo"].astype(f32)
    ln_ffn_w = params["ln_ffn_w"].astype(f32)
    ln_ffn_b = params["ln_ffn_b"].astype(f32)
    w1 = params["w1"].reshape(D, n_fc, f_chunk).transpose(1, 0, 2).astype(bf16)  # (nc, D, fc)
    b1 = params["b1"].reshape(n_fc, 1, f_chunk).astype(f32)                      # (nc, 1, fc)
    w2 = params["w2"].reshape(n_fc, f_chunk, D).astype(bf16)                     # (nc, fc, D)
    b2 = params["b2"].astype(f32)

    kv_weights = (ln_ca_w, ln_ca_b, wkv, bkv)
    main_weights = (wq, bq, wo, bo, ln_ffn_w, ln_ffn_b, w1, b1, w2, b2)

    def nbytes(a):
        return a.size * a.dtype.itemsize

    # Per-generation VMEM ceiling (v7x has only 64 MiB per TensorCore).
    try:
        info = pltpu.get_tpu_info()
        vmem_cap = int(getattr(info, "vmem_capacity_bytes", 0)) or 64 * 2**20
    except Exception:
        vmem_cap = 64 * 2**20
    vmem_ceiling = (vmem_cap * 7) // 8

    def clamp_vmem(est):
        return int(max(32 * 2**20, min(2 * est, vmem_ceiling)))

    def const_spec(arr, n_axes, mode):
        zeros = (0,) * arr.ndim
        idx = (lambda b: zeros) if n_axes == 1 else (lambda b, i: zeros)
        if mode is None:
            return pl.BlockSpec(arr.shape, idx)
        return pl.BlockSpec(arr.shape, idx, pipeline_mode=mode)

    def run(weight_mode):
        wbuf = 1 if weight_mode is not None else 2

        # ---- stage 1: K^T / V projection (grid over batch) ----
        kv_est = (2 * Tk * D * 4                         # enc tile (double-buffered f32)
                  + Tk * 2 * D * 4                       # kv intermediate f32
                  + wbuf * sum(nbytes(w) for w in kv_weights)
                  + 2 * 2 * (2 * Tk * D))                # K^T + V outputs bf16, 2 buffers
        k_t, v = pl.pallas_call(
            kv_proj_kernel,
            grid=(B,),
            in_specs=[pl.BlockSpec((None, Tk, D), lambda b: (b, 0, 0))]
                     + [const_spec(w, 1, weight_mode) for w in kv_weights],
            out_specs=(pl.BlockSpec((None, D, Tk), lambda b: (b, 0, 0)),
                       pl.BlockSpec((None, Tk, D), lambda b: (b, 0, 0))),
            out_shape=(jax.ShapeDtypeStruct((B, D, Tk), bf16),
                       jax.ShapeDtypeStruct((B, Tk, D), bf16)),
            compiler_params=pltpu.CompilerParams(
                dimension_semantics=("parallel",),
                vmem_limit_bytes=clamp_vmem(kv_est)),
        )(encoder_output, *kv_weights)

        # ---- stage 2: attention + FFN (grid over batch x Tq tiles, both parallel) ----
        main_est = (wbuf * sum(nbytes(w) for w in main_weights)
                    + 2 * 2 * tq_tile * D * 4            # seqs in + out tiles, f32
                    + 2 * 2 * (2 * Tk * D)               # K^T + V bf16, double-buffered
                    + tq_tile * D * 2                    # ctx staging scratch bf16
                    + 4 * tq_tile * max(Tk, f_chunk) * 4)  # score / FFN intermediates
        kernel = functools.partial(decoder_layer_kernel, num_heads=num_heads)
        return pl.pallas_call(
            kernel,
            grid=(B, n_tq),
            in_specs=[pl.BlockSpec((None, tq_tile, D), lambda b, i: (b, i, 0)),
                      pl.BlockSpec((None, D, Tk), lambda b, i: (b, 0, 0)),
                      pl.BlockSpec((None, Tk, D), lambda b, i: (b, 0, 0))]
                     + [const_spec(w, 2, weight_mode) for w in main_weights],
            out_specs=pl.BlockSpec((None, tq_tile, D), lambda b, i: (b, i, 0)),
            out_shape=jax.ShapeDtypeStruct((B, Tq, D), seqs.dtype),
            scratch_shapes=[pltpu.VMEM((tq_tile, D), bf16)],
            compiler_params=pltpu.CompilerParams(
                dimension_semantics=("parallel", "parallel"),
                vmem_limit_bytes=clamp_vmem(main_est)),
        )(seqs, k_t, v, *main_weights)

    try:
        # Grid-invariant weights single-buffered: halves resident weight VMEM.
        return run(pl.Buffered(buffer_count=1))
    except Exception:
        # TODO(synk): some Pallas versions may reject single-buffered inputs;
        # fall back to default double-buffering (correct, more VMEM).
        return run(None)


# ---------------- pure-JAX reference (f32, for verification) ----------------
def reference(seqs, enc, p, *, num_heads):
    def ln(x, w, b):
        m = jnp.mean(x, axis=-1, keepdims=True)
        v = jnp.mean((x - m) ** 2, axis=-1, keepdims=True)
        return (x - m) / jnp.sqrt(v + 1e-5) * w + b

    B, Tq, D = seqs.shape
    dh = D // num_heads
    residual = seqs
    enc_n = ln(enc, p["ln_ca_w"], p["ln_ca_b"])
    q = seqs @ p["wq"] + p["bq"]
    k = enc_n @ p["wk"] + p["bk"]
    v = enc_n @ p["wv"] + p["bv"]
    q = q.reshape(B, Tq, num_heads, dh).transpose(0, 2, 1, 3)
    k = k.reshape(B, -1, num_heads, dh).transpose(0, 2, 1, 3)
    v = v.reshape(B, -1, num_heads, dh).transpose(0, 2, 1, 3)
    s = jnp.einsum("bhqd,bhkd->bhqk", q, k) / (dh ** 0.5)
    a = jax.nn.softmax(s, axis=-1)
    o = jnp.einsum("bhqk,bhkd->bhqd", a, v).transpose(0, 2, 1, 3).reshape(B, Tq, D)
    o = o @ p["wo"] + p["bo"]
    x = o + residual
    residual = x
    y = ln(x, p["ln_ffn_w"], p["ln_ffn_b"])
    y = jax.nn.gelu(y @ p["w1"] + p["b1"], approximate=False)
    y = y @ p["w2"] + p["b2"]
    return y + residual


def make_params(key, d_model, ffn_inner):
    ks = jax.random.split(key, 8)
    scale = 0.05
    return {
        "ln_ca_w": jnp.ones((1, d_model), jnp.float32),
        "ln_ca_b": jnp.zeros((1, d_model), jnp.float32),
        "wq": scale * jax.random.normal(ks[0], (d_model, d_model), jnp.float32),
        "bq": jnp.zeros((1, d_model), jnp.float32),
        "wk": scale * jax.random.normal(ks[1], (d_model, d_model), jnp.float32),
        "bk": jnp.zeros((1, d_model), jnp.float32),
        "wv": scale * jax.random.normal(ks[2], (d_model, d_model), jnp.float32),
        "bv": jnp.zeros((1, d_model), jnp.float32),
        "wo": scale * jax.random.normal(ks[3], (d_model, d_model), jnp.float32),
        "bo": jnp.zeros((1, d_model), jnp.float32),
        "ln_ffn_w": jnp.ones((1, d_model), jnp.float32),
        "ln_ffn_b": jnp.zeros((1, d_model), jnp.float32),
        "w1": scale * jax.random.normal(ks[4], (d_model, ffn_inner), jnp.float32),
        "b1": jnp.zeros((1, ffn_inner), jnp.float32),
        "w2": scale * jax.random.normal(ks[5], (ffn_inner, d_model), jnp.float32),
        "b2": jnp.zeros((1, d_model), jnp.float32),
    }


if __name__ == "__main__":
    B, Tq, Tk, D, H = 2, 8, 16, 32, 4
    FFN_INNER = 4 * D

    key = jax.random.PRNGKey(0)
    k_seq, k_enc, k_par = jax.random.split(key, 3)
    seqs = jax.random.normal(k_seq, (B, Tq, D), jnp.float32)
    encoder_output = jax.random.normal(k_enc, (B, Tk, D), jnp.float32)
    params = make_params(k_par, D, FFN_INNER)

    out = cross_attention_decoder_layer(seqs, encoder_output, params, num_heads=H)
    out = jax.block_until_ready(out)

    ref = reference(seqs, encoder_output, params, num_heads=H)
    assert out.shape == (B, Tq, D)
    err = float(jnp.max(jnp.abs(out - ref)))
    # bf16 matmul operands + approx reciprocal introduce ~1e-3-level differences.
    assert err < 2e-2, f"kernel/reference mismatch: {err}"

    print("KERNEL_OK")
</pallas_src>

<mosaic_0001>
module attributes {stable_mosaic.version = 11 : i64} {
  func.func @kv_proj_kernel(%arg0: i32, %arg1: memref<1x16x32xf32, #tpu.memory_space<vmem>>, %arg2: memref<1x32xf32, #tpu.memory_space<vmem>>, %arg3: memref<1x32xf32, #tpu.memory_space<vmem>>, %arg4: memref<32x64xbf16, #tpu.memory_space<vmem>>, %arg5: memref<1x64xf32, #tpu.memory_space<vmem>>, %arg6: memref<1x32x16xbf16, #tpu.memory_space<vmem>>, %arg7: memref<1x16x32xbf16, #tpu.memory_space<vmem>>) attributes {dimension_semantics = [#tpu.dimension_semantics<parallel>], iteration_bounds = array<i64: 2>, scalar_prefetch = 0 : i64, scratch_operands = 0 : i64, tpu.core_type = #tpu.core_type<tc>, window_params = [{transform_indices = @transform_0, window_bounds = array<i64: 1, 16, 32>}, {pipeline_mode = #tpu.pipeline_mode<synchronous>, transform_indices = @transform_1, window_bounds = array<i64: 1, 32>}, {pipeline_mode = #tpu.pipeline_mode<synchronous>, transform_indices = @transform_2, window_bounds = array<i64: 1, 32>}, {pipeline_mode = #tpu.pipeline_mode<synchronous>, transform_indices = @transform_3, window_bounds = array<i64: 32, 64>}, {pipeline_mode = #tpu.pipeline_mode<synchronous>, transform_indices = @transform_4, window_bounds = array<i64: 1, 64>}, {transform_indices = @transform_5, window_bounds = array<i64: 1, 32, 16>}, {transform_indices = @transform_6, window_bounds = array<i64: 1, 16, 32>}]} {
    %c0 = arith.constant 0 : index
    %c0_0 = arith.constant 0 : index
    %c0_1 = arith.constant 0 : index
    %0 = vector.load %arg1[%c0, %c0_0, %c0_1] : memref<1x16x32xf32, #tpu.memory_space<vmem>>, vector<1x16x32xf32>
    %1 = vector.shape_cast %0 : vector<1x16x32xf32> to vector<16x32xf32>
    %c0_2 = arith.constant 0 : index
    %c0_3 = arith.constant 0 : index
    %2 = vector.load %arg2[%c0_2, %c0_3] : memref<1x32xf32, #tpu.memory_space<vmem>>, vector<1x32xf32>
    %c0_4 = arith.constant 0 : index
    %c0_5 = arith.constant 0 : index
    %3 = vector.load %arg3[%c0_4, %c0_5] : memref<1x32xf32, #tpu.memory_space<vmem>>, vector<1x32xf32>
    %cst = arith.constant dense<0.000000e+00> : vector<16xf32>
    %4 = vector.multi_reduction <add>, %1, %cst [1] : vector<16x32xf32> to vector<16xf32>
    %5 = vector.shape_cast %4 : vector<16xf32> to vector<16x1xf32>
    %cst_6 = arith.constant 3.200000e+01 : f32
    %6 = vector.broadcast %cst_6 : f32 to vector<16x1xf32>
    %7 = arith.divf %5, %6 : vector<16x1xf32>
    %8 = vector.broadcast %7 : vector<16x1xf32> to vector<16x32xf32>
    %9 = arith.subf %1, %8 : vector<16x32xf32>
    %10 = arith.mulf %9, %9 : vector<16x32xf32>
    %cst_7 = arith.constant dense<0.000000e+00> : vector<16xf32>
    %11 = vector.multi_reduction <add>, %10, %cst_7 [1] : vector<16x32xf32> to vector<16xf32>
    %12 = vector.shape_cast %11 : vector<16xf32> to vector<16x1xf32>
    %cst_8 = arith.constant 3.200000e+01 : f32
    %13 = vector.broadcast %cst_8 : f32 to vector<16x1xf32>
    %14 = arith.divf %12, %13 : vector<16x1xf32>
    %15 = vector.broadcast %7 : vector<16x1xf32> to vector<16x32xf32>
    %16 = arith.subf %1, %15 : vector<16x32xf32>
    %cst_9 = arith.constant 9.99999974E-6 : f32
    %17 = vector.broadcast %cst_9 : f32 to vector<16x1xf32>
    %18 = arith.addf %14, %17 : vector<16x1xf32>
    %19 = math.rsqrt %18 : vector<16x1xf32>
    %20 = vector.broadcast %19 : vector<16x1xf32> to vector<16x32xf32>
    %21 = arith.mulf %16, %20 : vector<16x32xf32>
    %22 = vector.broadcast %2 : vector<1x32xf32> to vector<16x32xf32>
    %23 = arith.mulf %21, %22 : vector<16x32xf32>
    %24 = vector.broadcast %3 : vector<1x32xf32> to vector<16x32xf32>
    %25 = arith.addf %23, %24 : vector<16x32xf32>
    %26 = arith.truncf %25 : vector<16x32xf32> to vector<16x32xbf16>
    %c0_10 = arith.constant 0 : index
    %c0_11 = arith.constant 0 : index
    %27 = vector.load %arg4[%c0_10, %c0_11] : memref<32x64xbf16, #tpu.memory_space<vmem>>, vector<32x64xbf16>
    %cst_12 = arith.constant dense<0.000000e+00> : vector<16x64xf32>
    %28 = tpu.matmul %26, %27, %cst_12 {dimension_numbers = #tpu.dot_dimension_numbers<[1], [0], [0], [1], [0, 0, 1, 1], [], []>} : vector<16x32xbf16>, vector<32x64xbf16>, vector<16x64xf32> -> vector<16x64xf32>
    %c0_13 = arith.constant 0 : index
    %c0_14 = arith.constant 0 : index
    %29 = vector.load %arg5[%c0_13, %c0_14] : memref<1x64xf32, #tpu.memory_space<vmem>>, vector<1x64xf32>
    %30 = vector.broadcast %29 : vector<1x64xf32> to vector<16x64xf32>
    %31 = arith.addf %28, %30 : vector<16x64xf32>
    %32 = vector.extract_strided_slice %31 {offsets = [0, 0], sizes = [16, 32], strides = [1, 1]} : vector<16x64xf32> to vector<16x32xf32>
    %33 = tpu.transpose %32, [1, 0] : vector<16x32xf32> -> vector<32x16xf32>
    %34 = arith.truncf %33 : vector<32x16xf32> to vector<32x16xbf16>
    %c0_15 = arith.constant 0 : index
    %c0_16 = arith.constant 0 : index
    %c0_17 = arith.constant 0 : index
    %35 = vector.load %arg6[%c0_15, %c0_16, %c0_17] : memref<1x32x16xbf16, #tpu.memory_space<vmem>>, vector<1x32x16xbf16>
    %36 = vector.shape_cast %35 : vector<1x32x16xbf16> to vector<32x16xbf16>
    %37 = vector.shape_cast %34 : vector<32x16xbf16> to vector<1x32x16xbf16>
    tpu.vector_store %arg6[%c0_15, %c0_16, %c0_17], %37 {strides = array<i32>} : memref<1x32x16xbf16, #tpu.memory_space<vmem>>, vector<1x32x16xbf16>,
    %38 = vector.extract_strided_slice %31 {offsets = [0, 32], sizes = [16, 32], strides = [1, 1]} : vector<16x64xf32> to vector<16x32xf32>
    %39 = arith.truncf %38 : vector<16x32xf32> to vector<16x32xbf16>
    %c0_18 = arith.constant 0 : index
    %c0_19 = arith.constant 0 : index
    %c0_20 = arith.constant 0 : index
    %40 = vector.load %arg7[%c0_18, %c0_19, %c0_20] : memref<1x16x32xbf16, #tpu.memory_space<vmem>>, vector<1x16x32xbf16>
    %41 = vector.shape_cast %40 : vector<1x16x32xbf16> to vector<16x32xbf16>
    %42 = vector.shape_cast %39 : vector<16x32xbf16> to vector<1x16x32xbf16>
    tpu.vector_store %arg7[%c0_18, %c0_19, %c0_20], %42 {strides = array<i32>} : memref<1x16x32xbf16, #tpu.memory_space<vmem>>, vector<1x16x32xbf16>,
    return
  }
  func.func @transform_0(%arg0: i32) -> (i32, i32, i32) {
    %c0_i32 = arith.constant 0 : i32
    %c0_i32_0 = arith.constant 0 : i32
    %c0_i32_1 = arith.constant 0 : i32
    return %arg0, %c0_i32, %c0_i32_0 : i32, i32, i32
  }
  func.func @transform_1(%arg0: i32) -> (i32, i32) {
    %c0_i32 = arith.constant 0 : i32
    %c0_i32_0 = arith.constant 0 : i32
    %c0_i32_1 = arith.constant 0 : i32
    return %c0_i32, %c0_i32_0 : i32, i32
  }
  func.func @transform_2(%arg0: i32) -> (i32, i32) {
    %c0_i32 = arith.constant 0 : i32
    %c0_i32_0 = arith.constant 0 : i32
    %c0_i32_1 = arith.constant 0 : i32
    return %c0_i32, %c0_i32_0 : i32, i32
  }
  func.func @transform_3(%arg0: i32) -> (i32, i32) {
    %c0_i32 = arith.constant 0 : i32
    %c0_i32_0 = arith.constant 0 : i32
    %c0_i32_1 = arith.constant 0 : i32
    return %c0_i32, %c0_i32_0 : i32, i32
  }
  func.func @transform_4(%arg0: i32) -> (i32, i32) {
    %c0_i32 = arith.constant 0 : i32
    %c0_i32_0 = arith.constant 0 : i32
    %c0_i32_1 = arith.constant 0 : i32
    return %c0_i32, %c0_i32_0 : i32, i32
  }
  func.func @transform_5(%arg0: i32) -> (i32, i32, i32) {
    %c0_i32 = arith.constant 0 : i32
    %c0_i32_0 = arith.constant 0 : i32
    %c0_i32_1 = arith.constant 0 : i32
    return %arg0, %c0_i32, %c0_i32_0 : i32, i32, i32
  }
  func.func @transform_6(%arg0: i32) -> (i32, i32, i32) {
    %c0_i32 = arith.constant 0 : i32
    %c0_i32_0 = arith.constant 0 : i32
    %c0_i32_1 = arith.constant 0 : i32
    return %arg0, %c0_i32, %c0_i32_0 : i32, i32, i32
  }
}

module attributes {stable_mosaic.version = 11 : i64} {
  func.func @kv_proj_kernel(%arg0: i32, %arg1: memref<1x16x32xf32, #tpu.memory_space<vmem>>, %arg2: memref<1x32xf32, #tpu.memory_space<vmem>>, %arg3: memref<1x32xf32, #tpu.memory_space<vmem>>, %arg4: memref<32x64xbf16, #tpu.memory_space<vmem>>, %arg5: memref<1x64xf32, #tpu.memory_space<vmem>>, %arg6: memref<1x32x16xbf16, #tpu.memory_space<vmem>>, %arg7: memref<1x16x32xbf16, #tpu.memory_space<vmem>>) attributes {dimension_semantics = [#tpu.dimension_semantics<parallel>], iteration_bounds = array<i64: 2>, scalar_prefetch = 0 : i64, scratch_operands = 0 : i64, tpu.core_type = #tpu.core_type<tc>, window_params = [{transform_indices = @transform_0, window_bounds = array<i64: 1, 16, 32>}, {pipeline_mode = #tpu.pipeline_mode<synchronous>, transform_indices = @transform_1, window_bounds = array<i64: 1, 32>}, {pipeline_mode = #tpu.pipeline_mode<synchronous>, transform_indices = @transform_2, window_bounds = array<i64: 1, 32>}, {pipeline_mode = #tpu.pipeline_mode<synchronous>, transform_indices = @transform_3, window_bounds = array<i64: 32, 64>}, {pipeline_mode = #tpu.pipeline_mode<synchronous>, transform_indices = @transform_4, window_bounds = array<i64: 1, 64>}, {transform_indices = @transform_5, window_bounds = array<i64: 1, 32, 16>}, {transform_indices = @transform_6, window_bounds = array<i64: 1, 16, 32>}]} {
    %c0 = arith.constant 0 : index
    %c0_0 = arith.constant 0 : index
    %c0_1 = arith.constant 0 : index
    %0 = vector.load %arg1[%c0, %c0_0, %c0_1] : memref<1x16x32xf32, #tpu.memory_space<vmem>>, vector<1x16x32xf32>
    %1 = vector.shape_cast %0 : vector<1x16x32xf32> to vector<16x32xf32>
    %c0_2 = arith.constant 0 : index
    %c0_3 = arith.constant 0 : index
    %2 = vector.load %arg2[%c0_2, %c0_3] : memref<1x32xf32, #tpu.memory_space<vmem>>, vector<1x32xf32>
    %c0_4 = arith.constant 0 : index
    %c0_5 = arith.constant 0 : index
    %3 = vector.load %arg3[%c0_4, %c0_5] : memref<1x32xf32, #tpu.memory_space<vmem>>, vector<1x32xf32>
    %cst = arith.constant dense<0.000000e+00> : vector<16xf32>
    %4 = vector.multi_reduction <add>, %1, %cst [1] : vector<16x32xf32> to vector<16xf32>
    %5 = vector.shape_cast %4 : vector<16xf32> to vector<16x1xf32>
    %cst_6 = arith.constant 3.200000e+01 : f32
    %6 = vector.broadcast %cst_6 : f32 to vector<16x1xf32>
    %7 = arith.divf %5, %6 : vector<16x1xf32>
    %8 = vector.broadcast %7 : vector<16x1xf32> to vector<16x32xf32>
    %9 = arith.subf %1, %8 : vector<16x32xf32>
    %10 = arith.mulf %9, %9 : vector<16x32xf32>
    %cst_7 = arith.constant dense<0.000000e+00> : vector<16xf32>
    %11 = vector.multi_reduction <add>, %10, %cst_7 [1] : vector<16x32xf32> to vector<16xf32>
    %12 = vector.shape_cast %11 : vector<16xf32> to vector<16x1xf32>
    %cst_8 = arith.constant 3.200000e+01 : f32
    %13 = vector.broadcast %cst_8 : f32 to vector<16x1xf32>
    %14 = arith.divf %12, %13 : vector<16x1xf32>
    %15 = vector.broadcast %7 : vector<16x1xf32> to vector<16x32xf32>
    %16 = arith.subf %1, %15 : vector<16x32xf32>
    %cst_9 = arith.constant 9.99999974E-6 : f32
    %17 = vector.broadcast %cst_9 : f32 to vector<16x1xf32>
    %18 = arith.addf %14, %17 : vector<16x1xf32>
    %19 = math.rsqrt %18 : vector<16x1xf32>
    %20 = vector.broadcast %19 : vector<16x1xf32> to vector<16x32xf32>
    %21 = arith.mulf %16, %20 : vector<16x32xf32>
    %22 = vector.broadcast %2 : vector<1x32xf32> to vector<16x32xf32>
    %23 = arith.mulf %21, %22 : vector<16x32xf32>
    %24 = vector.broadcast %3 : vector<1x32xf32> to vector<16x32xf32>
    %25 = arith.addf %23, %24 : vector<16x32xf32>
    %26 = arith.truncf %25 : vector<16x32xf32> to vector<16x32xbf16>
    %c0_10 = arith.constant 0 : index
    %c0_11 = arith.constant 0 : index
    %27 = vector.load %arg4[%c0_10, %c0_11] : memref<32x64xbf16, #tpu.memory_space<vmem>>, vector<32x64xbf16>
    %cst_12 = arith.constant dense<0.000000e+00> : vector<16x64xf32>
    %28 = tpu.matmul %26, %27, %cst_12 {dimension_numbers = #tpu.dot_dimension_numbers<[1], [0], [0], [1], [0, 0, 1, 1], [], []>} : vector<16x32xbf16>, vector<32x64xbf16>, vector<16x64xf32> -> vector<16x64xf32>
    %c0_13 = arith.constant 0 : index
    %c0_14 = arith.constant 0 : index
    %29 = vector.load %arg5[%c0_13, %c0_14] : memref<1x64xf32, #tpu.memory_space<vmem>>, vector<1x64xf32>
    %30 = vector.broadcast %29 : vector<1x64xf32> to vector<16x64xf32>
    %31 = arith.addf %28, %30 : vector<16x64xf32>
    %32 = vector.extract_strided_slice %31 {offsets = [0, 0], sizes = [16, 32], strides = [1, 1]} : vector<16x64xf32> to vector<16x32xf32>
    %33 = tpu.transpose %32, [1, 0] : vector<16x32xf32> -> vector<32x16xf32>
    %34 = arith.truncf %33 : vector<32x16xf32> to vector<32x16xbf16>
    %c0_15 = arith.constant 0 : index
    %c0_16 = arith.constant 0 : index
    %c0_17 = arith.constant 0 : index
    %35 = vector.load %arg6[%c0_15, %c0_16, %c0_17] : memref<1x32x16xbf16, #tpu.memory_space<vmem>>, vector<1x32x16xbf16>
    %36 = vector.shape_cast %35 : vector<1x32x16xbf16> to vector<32x16xbf16>
    %37 = vector.shape_cast %34 : vector<32x16xbf16> to vector<1x32x16xbf16>
    tpu.vector_store %arg6[%c0_15, %c0_16, %c0_17], %37 {strides = array<i32>} : memref<1x32x16xbf16, #tpu.memory_space<vmem>>, vector<1x32x16xbf16>,
    %38 = vector.extract_strided_slice %31 {offsets = [0, 32], sizes = [16, 32], strides = [1, 1]} : vector<16x64xf32> to vector<16x32xf32>
    %39 = arith.truncf %38 : vector<16x32xf32> to vector<16x32xbf16>
    %c0_18 = arith.constant 0 : index
    %c0_19 = arith.constant 0 : index
    %c0_20 = arith.constant 0 : index
    %40 = vector.load %arg7[%c0_18, %c0_19, %c0_20] : memref<1x16x32xbf16, #tpu.memory_space<vmem>>, vector<1x16x32xbf16>
    %41 = vector.shape_cast %40 : vector<1x16x32xbf16> to vector<16x32xbf16>
    %42 = vector.shape_cast %39 : vector<16x32xbf16> to vector<1x16x32xbf16>
    tpu.vector_store %arg7[%c0_18, %c0_19, %c0_20], %42 {strides = array<i32>} : memref<1x16x32xbf16, #tpu.memory_space<vmem>>, vector<1x16x32xbf16>,
    return
  }
  func.func @transform_0(%arg0: i32) -> (i32, i32, i32) {
    %c0_i32 = arith.constant 0 : i32
    %c0_i32_0 = arith.constant 0 : i32
    %c0_i32_1 = arith.constant 0 : i32
    return %arg0, %c0_i32, %c0_i32_0 : i32, i32, i32
  }
  func.func @transform_1(%arg0: i32) -> (i32, i32) {
    %c0_i32 = arith.constant 0 : i32
    %c0_i32_0 = arith.constant 0 : i32
    %c0_i32_1 = arith.constant 0 : i32
    return %c0_i32, %c0_i32_0 : i32, i32
  }
  func.func @transform_2(%arg0: i32) -> (i32, i32) {
    %c0_i32 = arith.constant 0 : i32
    %c0_i32_0 = arith.constant 0 : i32
    %c0_i32_1 = arith.constant 0 : i32
    return %c0_i32, %c0_i32_0 : i32, i32
  }
  func.func @transform_3(%arg0: i32) -> (i32, i32) {
    %c0_i32 = arith.constant 0 : i32
    %c0_i32_0 = arith.constant 0 : i32
    %c0_i32_1 = arith.constant 0 : i32
    return %c0_i32, %c0_i32_0 : i32, i32
  }
  func.func @transform_4(%arg0: i32) -> (i32, i32) {
    %c0_i32 = arith.constant 0 : i32
    %c0_i32_0 = arith.constant 0 : i32
    %c0_i32_1 = arith.constant 0 : i32
    return %c0_i32, %c0_i32_0 : i32, i32
  }
  func.func @transform_5(%arg0: i32) -> (i32, i32, i32) {
    %c0_i32 = arith.constant 0 : i32
    %c0_i32_0 = arith.constant 0 : i32
    %c0_i32_1 = arith.constant 0 : i32
    return %arg0, %c0_i32, %c0_i32_0 : i32, i32, i32
  }
  func.func @transform_6(%arg0: i32) -> (i32, i32, i32) {
    %c0_i32 = arith.constant 0 : i32
    %c0_i32_0 = arith.constant 0 : i32
    %c0_i32_1 = arith.constant 0 : i32
    return %arg0, %c0_i32, %c0_i32_0 : i32, i32, i32
  }
}

</mosaic_0001>

<bundles_post_ra>
// kernel: tpu_custom_call.1
= control target key start
LH: loop header
LB: loop body
LE: loop exit
PB: predicated region body
PF: predicated region fallthrough
CT: control target
= control target key end

     0   :  { %12 = vsyncpa [#allocation3], 0  ;;  %s1133_s0 = inlined_call_operand.hbm [shape: f32[2,16,32], index: 0, kind: input, shape index: {}]   ;;  %s1134_s1 = inlined_call_operand.vmem [shape: f32[1,32], index: 1, kind: input, shape index: {}]   ;;  %s1135_s2 = inlined_call_operand.vmem [shape: f32[1,32], index: 2, kind: input, shape index: {}]   ;;  %s1136_s3 = inlined_call_operand.hbm [shape: bf16[32,64], index: 3, kind: input, shape index: {}]   ;;  %s1137_s4 = inlined_call_operand.vmem [shape: f32[1,64], index: 4, kind: input, shape index: {}]   ;;  %s1138_s5 = inlined_call_operand.vmem [shape: bf16[2,32,16], index: 5, kind: output, shape index: {0}]   ;;  %s1139_s6 = inlined_call_operand.hbm [shape: bf16[2,16,32], index: 6, kind: output, shape index: {1}]  }
   0x1   :  { %14 = vsyncpa [#allocation3 + $0x1], 0 }
   0x2   :  { %15 = vsyncpa [#allocation6], 0 }
   0x3   :  { %16 = vsyncpa [#allocation4], 0 }
   0x4   :  { %18 = vsyncpa [#allocation4 + $0x1], 0  ;;  %s912_s21 = smov 0   ;;  %s914_s22 = smov 0  }
   0x5   :  { %s916_s23 = smov 0   ;;  %s918_s24 = smov 0  }
   0x6 LB: > { %s933_s25 = sadd.s32 4294967295, %s863_s24   ;;  %s613_s26 = sadd.s32 4294967294, %s863_s24   ;;  %s863_s24 = sphi %s918_s24, %s1159_s24   ;;  %s859_s23 = sphi %s916_s23, %s1158_s23   ;;  %s855_s22 = sphi %s914_s22, %s1157_s22   ;;  %s851_s21 = sphi %s912_s21, %s1156_s21  }
   0x7   : > { %p44_p0 = scmp.ne.s32.totalorder %s855_s22, %s851_s21  ;;  %p1140_p1 = scmp.eq.s32.totalorder %s933_s25, 0 }
   0x8   : > { %p184_p3 = scmp.eq.s32.totalorder %s613_s26, 1  ;;  %p614_p5 = scmp.ge.s32.totalorder %s863_s24, 1 }
   0x9   : > { %p942_p4 = por %p1140_p1, %p44_p0  ;;  %p191_p7 = scmp.lt.s32.totalorder %s863_s24, 3 }
   0xa   : > { %p947_p6 = por %p184_p3, %p44_p0  ;;  %s865_s30 = smov [#allocation5]  }
   0xb   : > { %s1143_s27 = scalar_select %p942_p4, 1, 0 }
   0xc   : > { %s1144_s28 = scalar_select %p947_p6, 1, 0 }
   0xd   : > { %p952_p8 = pnand %p614_p5, %p191_p7  ;;  %s209_s7 = sshll.u32 %s865_s30, 4  ;;  %s956_s7 = int_to_ptr.vmem [resolvable:$true] %s209_s7 }
   0xe   : > { %s968_s9 = sadd.s32 1, %s863_s24   ;;  %s31_s10 = sadd.s32 1, %s859_s23 }
   0xf   : > { %s1145_s29 = scalar_select %p952_p8, 1, 0 }
  0x10   : > { %p671_p9 = pneg %p952_p8  ;;  %s28_s11 = ssub.s32 %s863_s24, %s968_s9 }
  0x11   : > { %s735_s14 = scalar_lea.hbm %s1136_s3, 256 }
  0x12   : > { %p963_p11 = pnand %p671_p9, %p1140_p1  ;;  %p736_p12 = scmp.ne.s32.totalorder %s1136_s3, %s735_s14 }
  0x13   : > { %p742_p5 = scmp.lt.u32.totalorder %s735_s14, %s1136_s3 }
  0x14   : > { %p737_p13 = pneg %p963_p11 }
  0x16   : > { %p738_p0 = pnand %p737_p13, %p736_p12 }
  0x18   : > { %p739_p3 = pneg %p738_p0 }
  0x1a   : > { %p744_p7 = pnand %p742_p5, %p739_p3 }
  0x1c   : > { %747 = shalt.err (!%p744_p7)
}
  0x1d   : > { %s748_s19 = scalar_lea.vmem %s956_s7, 256  ;;  %p756_p2 = scmp.lt.s32.totalorder %s956_s7, %s956_s7 }
  0x1e   : > { %p749_p9 = scmp.ne.s32.totalorder %s956_s7, %s748_s19  ;;  %p757_p6 = scmp.lt.s32.totalorder %s748_s19, %s748_s19 }
  0x20   : > { %p751_p10 = pnand %p749_p9, %p737_p13  ;;  %p758_p4 = por %p757_p6, %p756_p2 }
  0x22   : > { %p752_p1 = pneg %p751_p10 }
  0x24   : > { %p759_p8 = pnand %p758_p4, %p752_p1 }
  0x26   : > { %762 = shalt.err (!%p759_p8)
}
  0x27   : > { %s866_s20 = smov 64   ;;  %s867_s26 = smov 4  }
  0x28   : > { %674 = dma.hbm_to_vmem [thread:$0]  (!%p963_p11), %s1136_s3, 256, %s956_s7, [#allocation6], %s866_s20, %s866_s20, %s867_s26  }
  0x29   : > { %p29_p2 = scmp.eq.s32.totalorder %s28_s11, 0  ;;  %p38_p1 = scmp.ne.s32.totalorder %s859_s23, %s855_s22 }
  0x2a   : > { %p39_p4 = scmp.eq.s32.totalorder %s863_s24, 0  ;;  %p684_p6 = scmp.lt.s32.totalorder %s863_s24, 2 }
  0x2b   : > { %s999_s13 = scalar_select %p29_p2, %s859_s23, %s31_s10  }
  0x2c   : > { %p40_p8 = por %p39_p4, %p38_p1  ;;  %p1147_p10 = scmp.eq.s32.totalorder %s933_s25, 1 }
  0x2d   : > { %s226_s15 = sand.u32 1, %s859_s23   ;;  %s643_s16 = sshll.u32 %s863_s24, 8 }
  0x2e   : > { %p1003_p12 = por %p1147_p10, %p38_p1  ;;  %s617_s17 = sshll.u32 %s226_s15, 4 }
  0x2f   : > { %s1012_s19 = scalar_lea.hbm %s1133_s0, %s643_s16  ;;  %s230_s7 = scalar_lea.vmem [#allocation2], %s617_s17 }
  0x30   : > { %s237_s10 = sshll.u32 %s230_s7, 4  ;;  %p1014_p11 = pnand %p684_p6, %p40_p8  ;;  %s1018_s10 = int_to_ptr.vmem [resolvable:$true] %s237_s10 }
  0x31   : > { %s1020_s20 = scalar_lea.sflag [#allocation3], %s226_s15  ;;  %s763_s26 = scalar_lea.hbm %s1012_s19, 256 }
  0x32   : > { %p764_p13 = scmp.ne.s32.totalorder %s1012_s19, %s763_s26  ;;  %p765_p0 = pneg %p1014_p11 }
  0x33   : > { %s768_s16 = scalar_lea.hbm %s1133_s0, 512  ;;  %p769_p7 = scmp.lt.u32.totalorder %s1012_s19, %s1133_s0 }
  0x34   : > { %p766_p3 = pnand %p765_p0, %p764_p13  ;;  %p770_p9 = scmp.lt.u32.totalorder %s768_s16, %s763_s26 }
  0x35   : > { %p772_p1 = scmp.lt.u32.totalorder %s763_s26, %s1012_s19 }
  0x36   : > { %p767_p5 = pneg %p766_p3  ;;  %p771_p2 = por %p770_p9, %p769_p7 }
  0x38   : > { %p773_p4 = por %p772_p1, %p771_p2 }
  0x3a   : > { %p774_p6 = pnand %p773_p4, %p767_p5 }
  0x3c   : > { %777 = shalt.err (!%p774_p6)
}
  0x3d   : > { %s778_s15 = scalar_lea.vmem %s1018_s10, 256  ;;  %s868_s18 = smov [#allocation2]  }
  0x3e   : > { %p779_p8 = scmp.ne.s32.totalorder %s1018_s10, %s778_s15  ;;  %s783_s7 = sshll.u32 %s868_s18, 4  ;;  %s784_s7 = int_to_ptr.vmem [resolvable:$false] %s783_s7 }
  0x3f   : > { %s785_s30 = scalar_lea.vmem %s784_s7, 512  ;;  %p786_p3 = scmp.lt.s32.totalorder %s1018_s10, %s784_s7 }
  0x40   : > { %p781_p10 = pnand %p779_p8, %p765_p0  ;;  %p787_p7 = scmp.lt.s32.totalorder %s785_s30, %s778_s15 }
  0x42   : > { %p782_p13 = pneg %p781_p10  ;;  %p788_p9 = por %p787_p7, %p786_p3 }
  0x44   : > { %p789_p2 = pnand %p788_p9, %p782_p13 }
  0x46   : > { %792 = shalt.err (!%p789_p2)
}
  0x47   : > { %s869_s26 = smov 128   ;;  %s870_s12 = smov 8  }
  0x48   : > { %678 = dma.hbm_to_vmem [thread:$0]  (!%p1014_p11), %s1012_s19, 256, %s1018_s10, %s1020_s20, %s869_s26, %s869_s26, %s870_s12  }
  0x49   : > { %p1150_p0 = scmp.ne.s32.totalorder %s1145_s29, 0 }
  0x4a   : > { %s1051_s16 = sand.u32 (!%p1150_p0), 1, %s855_s22   ;;  %p1151_p5 = scmp.ne.s32.totalorder (!%p1150_p0), %s1143_s27, 0 }
  0x4b   : > { %249 = sbr.rel (%p1150_p0) target bundleno = 809 (0x329), region = 40  ;;  %s621_s17 = sshll.u32 (!%p1150_p0), %s1051_s16, 4 }
  0x4c   : > { %s252_s8 = scalar_lea.sflag (!%p1150_p0), [#allocation3], %s1051_s16  ;;  %s255_s15 = scalar_lea.vmem (!%p1150_p0), [#allocation2], %s621_s17 }
  0x52   : > { %838 = dma.done.wait (%p1151_p5), %s252_s8, 256  }
  0x53   : > { %840 = vsyncadd (%p1151_p5), %s252_s8, 4294967040  ;;  %p1152_p1 = scmp.eq.s32.totalorder %s933_s25, 0 }
  0x55   : > { %842 = dma.done.wait (%p1152_p1), [#allocation6], 256   ;;  %p1153_p11 = pmov %p1152_p1 }
  0x56   : > { %vm303_vm0 = vcmask 261120   ;;  %v299_v0 = vld [vmem:[%s255_s15] sm:$0xff]  ;;  %v300_v1 = vld [vmem:[%s255_s15 + $0x8] sm:$0xff]  ;;  %v871_v15 = vmov 0.0   ;;  %vm872_vm1 = vmmov 0   ;;  %s873_s18 = smov 96  }
  0x57   : > { %844 = vsyncadd (%p1153_p11), [#allocation6], 4294967040  ;;  %v304_v2 = vsel %vm303_vm0, %v299_v0, 0.0  ;;  %v307_v3 = vsel %vm303_vm0, %v300_v1, 0.0  ;;  %v729_v14 = vld [vmem:[#allocation5] sm:$0xff]   ;;  %655 = vmatprep.subr.bf16.mxu0 %v871_v15  ;;  %v730_v16 = vld [vmem:[#allocation5 + $0x8] sm:$0xff]   ;;  %659 = vmatprep.mubr.msk.bf16.mxu0 %vm872_vm1, %v871_v15 }
  0x58   : > { %305 = vadd.xlane.f32.xlu0 %v304_v2  ;;  %656 = vmatpush3.bf16.msra.mxu0 %v729_v14  ;;  %v626_v25 = vld [vmem:[%s1134_s1] ss:$0 sm:$0xff]  ;;  %s623_s7 = sshll.u32 %s1051_s16, 3  ;;  %s651_s12 = sshll.u32 %s933_s25, 7  ;;  %vm480_vm2 = vcmask 257024  }
  0x59   : > { %657 = vmatprep.subr.bf16.mxu0 %v871_v15  ;;  %v627_v29 = vld [vmem:[%s1135_s2] ss:$0 sm:$0xff]  ;;  %s292_s30 = scalar_lea.vmem [#allocation7], %s623_s7  ;;  %s1084_s15 = scalar_lea.hbm %s1139_s6, %s651_s12 }
  0x5a   : > { %v628_v34 = vld [vmem:[%s1137_s4] ss:$0 sm:$0xff]  ;;  %s505_s26 = sshll.u32 %s292_s30, 4  ;;  %s489_s27 = scalar_lea.sflag [#allocation4], %s1051_s16  ;;  %s1079_s26 = int_to_ptr.vmem [resolvable:$true] %s505_s26 }
  0x5b   : > { %s793_s29 = scalar_lea.vmem %s1079_s26, 128  ;;  %s874_s19 = smov [#allocation7]  }
  0x5c   : > { %308 = vadd.xlane.f32.xlu0 %v307_v3  ;;  %658 = vmatpush3.bf16.msra.mxu0 %v730_v16  ;;  %p794_p4 = scmp.ne.s32.totalorder %s1079_s26, %s793_s29  ;;  %s797_s10 = sshll.u32 %s874_s19, 4  ;;  %s798_s10 = int_to_ptr.vmem [resolvable:$false] %s797_s10 }
  0x5d   : > { %s799_s11 = scalar_lea.vmem %s798_s10, 256  ;;  %p800_p10 = scmp.lt.s32.totalorder %s1079_s26, %s798_s10 }
  0x5e   : > { %p795_p6 = pnand %p794_p4, %p1003_p12  ;;  %p801_p13 = scmp.lt.s32.totalorder %s799_s11, %s793_s29 }
  0x60   : > { %p796_p8 = pneg %p795_p6  ;;  %p802_p3 = por %p801_p13, %p800_p10 }
  0x62   : > { %p803_p7 = pnand %p802_p3, %p796_p8 }
  0xe5   : > { %v306_v4 = vpop.xlane.xlu0 %305 }
  0xe6   : > { %v311_v5 = vmul.f32 0.03125, %v306_v4 }
  0xe8   : > { %v313_v6 = vsub.f32 %v299_v0, %v311_v5 }
  0xe9   : > { %v309_v7 = vpop.xlane.xlu0 %308 }
  0xea   : > { %v312_v8 = vmul.f32 0.03125, %v309_v7  ;;  %v315_v9 = vmul.f32 %v313_v6, %v313_v6 }
  0xec   : > { %v314_v10 = vsub.f32 %v300_v1, %v312_v8  ;;  %v317_v11 = vsel %vm303_vm0, %v315_v9, 0.0 }
  0xed   : > { %318 = vadd.xlane.f32.xlu1 %v317_v11 }
  0xee   : > { %v316_v12 = vmul.f32 %v314_v10, %v314_v10 }
  0xf0   : > { %v320_v13 = vsel %vm303_vm0, %v316_v12, 0.0 }
  0xf1   : > { %321 = vadd.xlane.f32.xlu1 %v320_v13 }
 0x17a   : > { %v319_v17 = vpop.xlane.xlu1 %318 }
 0x17b   : > { %v323_v18 = vmul.f32 0.03125, %v319_v17 }
 0x17d   : > { %v325_v19 = vadd.f32 1e-05, %v323_v18 }
 0x17e   : > { %v322_v20 = vpop.xlane.xlu1 %321 }
 0x17f   : > { %731 = vrsqrt.f32 %v325_v19  ;;  %v324_v21 = vmul.f32 0.03125, %v322_v20 }
 0x181   : > { %v326_v22 = vadd.f32 1e-05, %v324_v21 }
 0x183   : > { %733 = vrsqrt.f32 %v326_v22 }
 0x189   : > { %v732_v23 = vpop.eup %731 }
 0x18a   : > { %v329_v24 = vmul.f32 %v732_v23, %v313_v6 }
 0x18c   : > { %v337_v28 = vmul.f32 %v626_v25, %v329_v24 }
 0x18d   : > { %v734_v26 = vpop.eup %733 }
 0x18e   : > { %v330_v27 = vmul.f32 %v734_v26, %v314_v10  ;;  %v345_v31 = vadd.f32 %v627_v29, %v337_v28 }
 0x190   : > { %v338_v30 = vmul.f32 %v626_v25, %v330_v27 }
 0x192   : > { %v346_v32 = vadd.f32 %v627_v29, %v338_v30 }
 0x194   : > { %v347_v33 = vpack.c.bf16 %v346_v32, %v345_v31 }
 0x196   : > { %660 = vmatmul.mubr.msk.bf16.vlgmr.msra.gmra.mrb[0].mxu0 %vm303_vm0, %v347_v33 }
 0x269   : > { %v408_v35 = vpop.f32.mrb[0].mxu0 }
 0x26a   : > { %v409_v36 = vadd.f32 %v628_v34, %v408_v35  ;;  %v661_v37 = vpop.f32.mrb[1].mxu0 }
 0x26b   : > { %v411_v38 = vpop.f32.mrb[2].mxu0 }
 0x26c   : > { %v649_v39 = vpack.c.bf16 %v409_v36, %v409_v36  ;;  %v412_v40 = vadd.f32 %v628_v34, %v411_v38  ;;  %v662_v41 = vpop.f32.mrb[3].mxu0 }
 0x26e   : > { %v650_v42 = vpack.c.bf16 %v412_v40, %v412_v40  ;;  %474 = vrot.lane.b32.xlu0 %v649_v39, %s873_s18 }
 0x270   : > { %476 = vrot.lane.b32.xlu1 %v650_v42, %s873_s18 }
 0x299   : > { %415 = vxpose.xlu1.b32.start [1/2] (short) (narrow) %v409_v36, 32 }
 0x29d   : > { %416 = vxpose.xlu1.b32.end [2/2] (short) (narrow) %v412_v40, 32 }
 0x2e0   : > { %v475_v43 = vpop.permute.xlu0 %474 }
 0x2e1   : > { %481 = vst.msk [vmem:[%s292_s30] sm:$0xf] %vm480_vm2, %v475_v43 }
 0x2e2   : > { %v477_v44 = vpop.permute.xlu1 %476 }
 0x2e3   : > { %482 = vst.msk [vmem:[%s292_s30 + $0x4] sm:$0xf] %vm480_vm2, %v477_v44 }
 0x2e4   : > { %806 = shalt.err (!%p803_p7)
}
 0x2e5   : > { %s807_s20 = scalar_lea.hbm %s1084_s15, 128  ;;  %s811_s30 = scalar_lea.hbm %s1139_s6, 256 }
 0x2e6   : > { %p808_p9 = scmp.ne.s32.totalorder %s1084_s15, %s807_s20  ;;  %p812_p5 = scmp.lt.u32.totalorder %s1084_s15, %s1139_s6 }
 0x2e7   : > { %p813_p1 = scmp.lt.u32.totalorder %s811_s30, %s807_s20  ;;  %p815_p4 = scmp.lt.u32.totalorder %s807_s20, %s1084_s15 }
 0x2e8   : > { %p809_p2 = pnand %p808_p9, %p1003_p12 }
 0x2e9   : > { %p814_p11 = por %p813_p1, %p812_p5 }
 0x2ea   : > { %p810_p0 = pneg %p809_p2 }
 0x2eb   : > { %p816_p6 = por %p815_p4, %p814_p11 }
 0x2ed   : > { %p817_p8 = pnand %p816_p6, %p810_p0 }
 0x2ef   : > { %820 = shalt.err (!%p817_p8)
}
 0x2f0   : > { %s875_s8 = smov 64   ;;  %s876_s29 = smov 4   ;;  %vm463_vm3 = vcmask 125952  }
 0x2f1   : > { %669 = dma.vmem_to_hbm [thread:$0]  (%p1003_p12), %s1079_s26, 128, %s1084_s15, %s489_s27, %s875_s8, %s875_s8, %s876_s29  }
 0x2f2   : > { %p293_p10 = scmp.lt.s32.totalorder %s933_s25, 1 }
 0x2f4   : > { %s1161_s25 = smov (!%p293_p10, %s933_s25), 1 }
 0x2f5   : > { %s644_s19 = sshll.u32 %s1161_s25, 4 }
 0x2f6   : > { %s297_s20 = scalar_lea.vmem %s1138_s5, %s644_s19 }
 0x319   : > { %v431_v45 = vpop.trf.xlu1 }
 0x31a   : > { %v645_v46 = vpack.c.bf16 %v431_v45, %v431_v45 }
 0x31c   : > { %464 = vst.msk [vmem:[%s297_s20] sm:$0xf] %vm463_vm3, %v645_v46 }
 0x31d   : > { %v432_v47 = vpop.trf.xlu1 }
 0x31e   : > { %v646_v48 = vpack.c.bf16 %v432_v47, %v432_v47 }
 0x320   : > { %465 = vst.msk [vmem:[%s297_s20 + $0x4] sm:$0xf] %vm463_vm3, %v646_v48 }
 0x321   : > { %v433_v49 = vpop.trf.xlu1 }
 0x322   : > { %v647_v50 = vpack.c.bf16 %v433_v49, %v433_v49 }
 0x324   : > { %466 = vst.msk [vmem:[%s297_s20 + $0x8] sm:$0xf] %vm463_vm3, %v647_v50 }
 0x325   : > { %v434_v51 = vpop.trf.xlu1 }
 0x326   : > { %v648_v52 = vpack.c.bf16 %v434_v51, %v434_v51 }
 0x328   : > { %467 = vst.msk [vmem:[%s297_s20 + $0xc] sm:$0xf] %vm463_vm3, %v648_v52 }
 0x329 PF: > { %s528_s25 = sand.u32 1, %s851_s21   ;;  %p1154_p12 = scmp.ne.s32.totalorder %s1144_s28, 0 }
 0x32a   : > { %p1155_p13 = scmp.ge.s32.totalorder %s863_s24, 2  ;;  %s529_s14 = scalar_lea.sflag [#allocation4], %s528_s25 }
 0x32c   : > { %p680_p3 = pnand %p1155_p13, %p1154_p12 }
 0x32e   : > { %846 = dma.done.wait (!%p680_p3), %s529_s14, 128  }
 0x32f   : > { %848 = vsyncadd (!%p680_p3), %s529_s14, 4294967168  ;;  %p21_p7 = scmp.ge.s32.totalorder %s968_s9, 4   ;;  %s1156_s21 = smov %s855_s22 }
 0x330   : > { %s1157_s22 = smov %s859_s23  ;;  %s1158_s23 = smov %s999_s13 }
 0x331   : > { %s1159_s24 = smov %s968_s9  ;;  %23 = sbr.rel (!%p21_p7) target bundleno = 6 (0x6), region = 101 }
 0x338   :  { %534 = vsyncpa [#allocation3], 1 }
 0x339   :  { %536 = vsyncpa [#allocation3 + $0x1], 1 }
 0x33a   :  { %537 = vsyncpa [#allocation6], 1 }
 0x33b   :  { %538 = vsyncpa [#allocation4], 1 }
 0x33c   :  { %540 = vsyncpa [#allocation4 + $0x1], 1 }

// kernel: tpu_custom_call.1
= control target key start
LH: loop header
LB: loop body
LE: loop exit
PB: predicated region body
PF: predicated region fallthrough
CT: control target
= control target key end

     0   :  { %12 = vsyncpa [#allocation3], 0  ;;  %s1133_s0 = inlined_call_operand.hbm [shape: f32[2,16,32], index: 0, kind: input, shape index: {}]   ;;  %s1134_s1 = inlined_call_operand.vmem [shape: f32[1,32], index: 1, kind: input, shape index: {}]   ;;  %s1135_s2 = inlined_call_operand.vmem [shape: f32[1,32], index: 2, kind: input, shape index: {}]   ;;  %s1136_s3 = inlined_call_operand.hbm [shape: bf16[32,64], index: 3, kind: input, shape index: {}]   ;;  %s1137_s4 = inlined_call_operand.vmem [shape: f32[1,64], index: 4, kind: input, shape index: {}]   ;;  %s1138_s5 = inlined_call_operand.vmem [shape: bf16[2,32,16], index: 5, kind: output, shape index: {0}]   ;;  %s1139_s6 = inlined_call_operand.hbm [shape: bf16[2,16,32], index: 6, kind: output, shape index: {1}]  }
   0x1   :  { %14 = vsyncpa [#allocation3 + $0x1], 0 }
   0x2   :  { %15 = vsyncpa [#allocation6], 0 }
   0x3   :  { %16 = vsyncpa [#allocation4], 0 }
   0x4   :  { %18 = vsyncpa [#allocation4 + $0x1], 0  ;;  %s912_s21 = smov 0   ;;  %s914_s22 = smov 0  }
   0x5   :  { %s916_s23 = smov 0   ;;  %s918_s24 = smov 0  }
   0x6 LB: > { %s933_s25 = sadd.s32 4294967295, %s863_s24   ;;  %s613_s26 = sadd.s32 4294967294, %s863_s24   ;;  %s863_s24 = sphi %s918_s24, %s1159_s24   ;;  %s859_s23 = sphi %s916_s23, %s1158_s23   ;;  %s855_s22 = sphi %s914_s22, %s1157_s22   ;;  %s851_s21 = sphi %s912_s21, %s1156_s21  }
   0x7   : > { %p44_p0 = scmp.ne.s32.totalorder %s855_s22, %s851_s21  ;;  %p1140_p1 = scmp.eq.s32.totalorder %s933_s25, 0 }
   0x8   : > { %p184_p3 = scmp.eq.s32.totalorder %s613_s26, 1  ;;  %p614_p5 = scmp.ge.s32.totalorder %s863_s24, 1 }
   0x9   : > { %p942_p4 = por %p1140_p1, %p44_p0  ;;  %p191_p7 = scmp.lt.s32.totalorder %s863_s24, 3 }
   0xa   : > { %p947_p6 = por %p184_p3, %p44_p0  ;;  %s865_s30 = smov [#allocation5]  }
   0xb   : > { %s1143_s27 = scalar_select %p942_p4, 1, 0 }
   0xc   : > { %s1144_s28 = scalar_select %p947_p6, 1, 0 }
   0xd   : > { %p952_p8 = pnand %p614_p5, %p191_p7  ;;  %s209_s7 = sshll.u32 %s865_s30, 4  ;;  %s956_s7 = int_to_ptr.vmem [resolvable:$true] %s209_s7 }
   0xe   : > { %s968_s9 = sadd.s32 1, %s863_s24   ;;  %s31_s10 = sadd.s32 1, %s859_s23 }
   0xf   : > { %s1145_s29 = scalar_select %p952_p8, 1, 0 }
  0x10   : > { %p671_p9 = pneg %p952_p8  ;;  %s28_s11 = ssub.s32 %s863_s24, %s968_s9 }
  0x11   : > { %s735_s14 = scalar_lea.hbm %s1136_s3, 256 }
  0x12   : > { %p963_p11 = pnand %p671_p9, %p1140_p1  ;;  %p736_p12 = scmp.ne.s32.totalorder %s1136_s3, %s735_s14 }
  0x13   : > { %p742_p5 = scmp.lt.u32.totalorder %s735_s14, %s1136_s3 }
  0x14   : > { %p737_p13 = pneg %p963_p11 }
  0x16   : > { %p738_p0 = pnand %p737_p13, %p736_p12 }
  0x18   : > { %p739_p3 = pneg %p738_p0 }
  0x1a   : > { %p744_p7 = pnand %p742_p5, %p739_p3 }
  0x1c   : > { %747 = shalt.err (!%p744_p7)
}
  0x1d   : > { %s748_s19 = scalar_lea.vmem %s956_s7, 256  ;;  %p756_p2 = scmp.lt.s32.totalorder %s956_s7, %s956_s7 }
  0x1e   : > { %p749_p9 = scmp.ne.s32.totalorder %s956_s7, %s748_s19  ;;  %p757_p6 = scmp.lt.s32.totalorder %s748_s19, %s748_s19 }
  0x20   : > { %p751_p10 = pnand %p749_p9, %p737_p13  ;;  %p758_p4 = por %p757_p6, %p756_p2 }
  0x22   : > { %p752_p1 = pneg %p751_p10 }
  0x24   : > { %p759_p8 = pnand %p758_p4, %p752_p1 }
  0x26   : > { %762 = shalt.err (!%p759_p8)
}
  0x27   : > { %s866_s20 = smov 64   ;;  %s867_s26 = smov 4  }
  0x28   : > { %674 = dma.hbm_to_vmem [thread:$0]  (!%p963_p11), %s1136_s3, 256, %s956_s7, [#allocation6], %s866_s20, %s866_s20, %s867_s26  }
  0x29   : > { %p29_p2 = scmp.eq.s32.totalorder %s28_s11, 0  ;;  %p38_p1 = scmp.ne.s32.totalorder %s859_s23, %s855_s22 }
  0x2a   : > { %p39_p4 = scmp.eq.s32.totalorder %s863_s24, 0  ;;  %p684_p6 = scmp.lt.s32.totalorder %s863_s24, 2 }
  0x2b   : > { %s999_s13 = scalar_select %p29_p2, %s859_s23, %s31_s10  }
  0x2c   : > { %p40_p8 = por %p39_p4, %p38_p1  ;;  %p1147_p10 = scmp.eq.s32.totalorder %s933_s25, 1 }
  0x2d   : > { %s226_s15 = sand.u32 1, %s859_s23   ;;  %s643_s16 = sshll.u32 %s863_s24, 8 }
  0x2e   : > { %p1003_p12 = por %p1147_p10, %p38_p1  ;;  %s617_s17 = sshll.u32 %s226_s15, 4 }
  0x2f   : > { %s1012_s19 = scalar_lea.hbm %s1133_s0, %s643_s16  ;;  %s230_s7 = scalar_lea.vmem [#allocation2], %s617_s17 }
  0x30   : > { %s237_s10 = sshll.u32 %s230_s7, 4  ;;  %p1014_p11 = pnand %p684_p6, %p40_p8  ;;  %s1018_s10 = int_to_ptr.vmem [resolvable:$true] %s237_s10 }
  0x31   : > { %s1020_s20 = scalar_lea.sflag [#allocation3], %s226_s15  ;;  %s763_s26 = scalar_lea.hbm %s1012_s19, 256 }
  0x32   : > { %p764_p13 = scmp.ne.s32.totalorder %s1012_s19, %s763_s26  ;;  %p765_p0 = pneg %p1014_p11 }
  0x33   : > { %s768_s16 = scalar_lea.hbm %s1133_s0, 512  ;;  %p769_p7 = scmp.lt.u32.totalorder %s1012_s19, %s1133_s0 }
  0x34   : > { %p766_p3 = pnand %p765_p0, %p764_p13  ;;  %p770_p9 = scmp.lt.u32.totalorder %s768_s16, %s763_s26 }
  0x35   : > { %p772_p1 = scmp.lt.u32.totalorder %s763_s26, %s1012_s19 }
  0x36   : > { %p767_p5 = pneg %p766_p3  ;;  %p771_p2 = por %p770_p9, %p769_p7 }
  0x38   : > { %p773_p4 = por %p772_p1, %p771_p2 }
  0x3a   : > { %p774_p6 = pnand %p773_p4, %p767_p5 }
  0x3c   : > { %777 = shalt.err (!%p774_p6)
}
  0x3d   : > { %s778_s15 = scalar_lea.vmem %s1018_s10, 256  ;;  %s868_s18 = smov [#allocation2]  }
  0x3e   : > { %p779_p8 = scmp.ne.s32.totalorder %s1018_s10, %s778_s15  ;;  %s783_s7 = sshll.u32 %s868_s18, 4  ;;  %s784_s7 = int_to_ptr.vmem [resolvable:$false] %s783_s7 }
  0x3f   : > { %s785_s30 = scalar_lea.vmem %s784_s7, 512  ;;  %p786_p3 = scmp.lt.s32.totalorder %s1018_s10, %s784_s7 }
  0x40   : > { %p781_p10 = pnand %p779_p8, %p765_p0  ;;  %p787_p7 = scmp.lt.s32.totalorder %s785_s30, %s778_s15 }
  0x42   : > { %p782_p13 = pneg %p781_p10  ;;  %p788_p9 = por %p787_p7, %p786_p3 }
  0x44   : > { %p789_p2 = pnand %p788_p9, %p782_p13 }
  0x46   : > { %792 = shalt.err (!%p789_p2)
}
  0x47   : > { %s869_s26 = smov 128   ;;  %s870_s12 = smov 8  }
  0x48   : > { %678 = dma.hbm_to_vmem [thread:$0]  (!%p1014_p11), %s1012_s19, 256, %s1018_s10, %s1020_s20, %s869_s26, %s869_s26, %s870_s12  }
  0x49   : > { %p1150_p0 = scmp.ne.s32.totalorder %s1145_s29, 0 }
  0x4a   : > { %s1051_s16 = sand.u32 (!%p1150_p0), 1, %s855_s22   ;;  %p1151_p5 = scmp.ne.s32.totalorder (!%p1150_p0), %s1143_s27, 0 }
  0x4b   : > { %249 = sbr.rel (%p1150_p0) target bundleno = 809 (0x329), region = 40  ;;  %s621_s17 = sshll.u32 (!%p1150_p0), %s1051_s16, 4 }
  0x4c   : > { %s252_s8 = scalar_lea.sflag (!%p1150_p0), [#allocation3], %s1051_s16  ;;  %s255_s15 = scalar_lea.vmem (!%p1150_p0), [#allocation2], %s621_s17 }
  0x52   : > { %838 = dma.done.wait (%p1151_p5), %s252_s8, 256  }
  0x53   : > { %840 = vsyncadd (%p1151_p5), %s252_s8, 4294967040  ;;  %p1152_p1 = scmp.eq.s32.totalorder %s933_s25, 0 }
  0x55   : > { %842 = dma.done.wait (%p1152_p1), [#allocation6], 256   ;;  %p1153_p11 = pmov %p1152_p1 }
  0x56   : > { %vm303_vm0 = vcmask 261120   ;;  %v299_v0 = vld [vmem:[%s255_s15] sm:$0xff]  ;;  %v300_v1 = vld [vmem:[%s255_s15 + $0x8] sm:$0xff]  ;;  %v871_v15 = vmov 0.0   ;;  %vm872_vm1 = vmmov 0   ;;  %s873_s18 = smov 96  }
  0x57   : > { %844 = vsyncadd (%p1153_p11), [#allocation6], 4294967040  ;;  %v304_v2 = vsel %vm303_vm0, %v299_v0, 0.0  ;;  %v307_v3 = vsel %vm303_vm0, %v300_v1, 0.0  ;;  %v729_v14 = vld [vmem:[#allocation5] sm:$0xff]   ;;  %655 = vmatprep.subr.bf16.mxu0 %v871_v15  ;;  %v730_v16 = vld [vmem:[#allocation5 + $0x8] sm:$0xff]   ;;  %659 = vmatprep.mubr.msk.bf16.mxu0 %vm872_vm1, %v871_v15 }
  0x58   : > { %305 = vadd.xlane.f32.xlu0 %v304_v2  ;;  %656 = vmatpush3.bf16.msra.mxu0 %v729_v14  ;;  %v626_v25 = vld [vmem:[%s1134_s1] ss:$0 sm:$0xff]  ;;  %s623_s7 = sshll.u32 %s1051_s16, 3  ;;  %s651_s12 = sshll.u32 %s933_s25, 7  ;;  %vm480_vm2 = vcmask 257024  }
  0x59   : > { %657 = vmatprep.subr.bf16.mxu0 %v871_v15  ;;  %v627_v29 = vld [vmem:[%s1135_s2] ss:$0 sm:$0xff]  ;;  %s292_s30 = scalar_lea.vmem [#allocation7], %s623_s7  ;;  %s1084_s15 = scalar_lea.hbm %s1139_s6, %s651_s12 }
  0x5a   : > { %v628_v34 = vld [vmem:[%s1137_s4] ss:$0 sm:$0xff]  ;;  %s505_s26 = sshll.u32 %s292_s30, 4  ;;  %s489_s27 = scalar_lea.sflag [#allocation4], %s1051_s16  ;;  %s1079_s26 = int_to_ptr.vmem [resolvable:$true] %s505_s26 }
  0x5b   : > { %s793_s29 = scalar_lea.vmem %s1079_s26, 128  ;;  %s874_s19 = smov [#allocation7]  }
  0x5c   : > { %308 = vadd.xlane.f32.xlu0 %v307_v3  ;;  %658 = vmatpush3.bf16.msra.mxu0 %v730_v16  ;;  %p794_p4 = scmp.ne.s32.totalorder %s1079_s26, %s793_s29  ;;  %s797_s10 = sshll.u32 %s874_s19, 4  ;;  %s798_s10 = int_to_ptr.vmem [resolvable:$false] %s797_s10 }
  0x5d   : > { %s799_s11 = scalar_lea.vmem %s798_s10, 256  ;;  %p800_p10 = scmp.lt.s32.totalorder %s1079_s26, %s798_s10 }
  0x5e   : > { %p795_p6 = pnand %p794_p4, %p1003_p12  ;;  %p801_p13 = scmp.lt.s32.totalorder %s799_s11, %s793_s29 }
  0x60   : > { %p796_p8 = pneg %p795_p6  ;;  %p802_p3 = por %p801_p13, %p800_p10 }
  0x62   : > { %p803_p7 = pnand %p802_p3, %p796_p8 }
  0xe5   : > { %v306_v4 = vpop.xlane.xlu0 %305 }
  0xe6   : > { %v311_v5 = vmul.f32 0.03125, %v306_v4 }
  0xe8   : > { %v313_v6 = vsub.f32 %v299_v0, %v311_v5 }
  0xe9   : > { %v309_v7 = vpop.xlane.xlu0 %308 }
  0xea   : > { %v312_v8 = vmul.f32 0.03125, %v309_v7  ;;  %v315_v9 = vmul.f32 %v313_v6, %v313_v6 }
  0xec   : > { %v314_v10 = vsub.f32 %v300_v1, %v312_v8  ;;  %v317_v11 = vsel %vm303_vm0, %v315_v9, 0.0 }
  0xed   : > { %318 = vadd.xlane.f32.xlu1 %v317_v11 }
  0xee   : > { %v316_v12 = vmul.f32 %v314_v10, %v314_v10 }
  0xf0   : > { %v320_v13 = vsel %vm303_vm0, %v316_v12, 0.0 }
  0xf1   : > { %321 = vadd.xlane.f32.xlu1 %v320_v13 }
 0x17a   : > { %v319_v17 = vpop.xlane.xlu1 %318 }
 0x17b   : > { %v323_v18 = vmul.f32 0.03125, %v319_v17 }
 0x17d   : > { %v325_v19 = vadd.f32 1e-05, %v323_v18 }
 0x17e   : > { %v322_v20 = vpop.xlane.xlu1 %321 }
 0x17f   : > { %731 = vrsqrt.f32 %v325_v19  ;;  %v324_v21 = vmul.f32 0.03125, %v322_v20 }
 0x181   : > { %v326_v22 = vadd.f32 1e-05, %v324_v21 }
 0x183   : > { %733 = vrsqrt.f32 %v326_v22 }
 0x189   : > { %v732_v23 = vpop.eup %731 }
 0x18a   : > { %v329_v24 = vmul.f32 %v732_v23, %v313_v6 }
 0x18c   : > { %v337_v28 = vmul.f32 %v626_v25, %v329_v24 }
 0x18d   : > { %v734_v26 = vpop.eup %733 }
 0x18e   : > { %v330_v27 = vmul.f32 %v734_v26, %v314_v10  ;;  %v345_v31 = vadd.f32 %v627_v29, %v337_v28 }
 0x190   : > { %v338_v30 = vmul.f32 %v626_v25, %v330_v27 }
 0x192   : > { %v346_v32 = vadd.f32 %v627_v29, %v338_v30 }
 0x194   : > { %v347_v33 = vpack.c.bf16 %v346_v32, %v345_v31 }
 0x196   : > { %660 = vmatmul.mubr.msk.bf16.vlgmr.msra.gmra.mrb[0].mxu0 %vm303_vm0, %v347_v33 }
 0x269   : > { %v408_v35 = vpop.f32.mrb[0].mxu0 }
 0x26a   : > { %v409_v36 = vadd.f32 %v628_v34, %v408_v35  ;;  %v661_v37 = vpop.f32.mrb[1].mxu0 }
 0x26b   : > { %v411_v38 = vpop.f32.mrb[2].mxu0 }
 0x26c   : > { %v649_v39 = vpack.c.bf16 %v409_v36, %v409_v36  ;;  %v412_v40 = vadd.f32 %v628_v34, %v411_v38  ;;  %v662_v41 = vpop.f32.mrb[3].mxu0 }
 0x26e   : > { %v650_v42 = vpack.c.bf16 %v412_v40, %v412_v40  ;;  %474 = vrot.lane.b32.xlu0 %v649_v39, %s873_s18 }
 0x270   : > { %476 = vrot.lane.b32.xlu1 %v650_v42, %s873_s18 }
 0x299   : > { %415 = vxpose.xlu1.b32.start [1/2] (short) (narrow) %v409_v36, 32 }
 0x29d   : > { %416 = vxpose.xlu1.b32.end [2/2] (short) (narrow) %v412_v40, 32 }
 0x2e0   : > { %v475_v43 = vpop.permute.xlu0 %474 }
 0x2e1   : > { %481 = vst.msk [vmem:[%s292_s30] sm:$0xf] %vm480_vm2, %v475_v43 }
 0x2e2   : > { %v477_v44 = vpop.permute.xlu1 %476 }
 0x2e3   : > { %482 = vst.msk [vmem:[%s292_s30 + $0x4] sm:$0xf] %vm480_vm2, %v477_v44 }
 0x2e4   : > { %806 = shalt.err (!%p803_p7)
}
 0x2e5   : > { %s807_s20 = scalar_lea.hbm %s1084_s15, 128  ;;  %s811_s30 = scalar_lea.hbm %s1139_s6, 256 }
 0x2e6   : > { %p808_p9 = scmp.ne.s32.totalorder %s1084_s15, %s807_s20  ;;  %p812_p5 = scmp.lt.u32.totalorder %s1084_s15, %s1139_s6 }
 0x2e7   : > { %p813_p1 = scmp.lt.u32.totalorder %s811_s30, %s807_s20  ;;  %p815_p4 = scmp.lt.u32.totalorder %s807_s20, %s1084_s15 }
 0x2e8   : > { %p809_p2 = pnand %p808_p9, %p1003_p12 }
 0x2e9   : > { %p814_p11 = por %p813_p1, %p812_p5 }
 0x2ea   : > { %p810_p0 = pneg %p809_p2 }
 0x2eb   : > { %p816_p6 = por %p815_p4, %p814_p11 }
 0x2ed   : > { %p817_p8 = pnand %p816_p6, %p810_p0 }
 0x2ef   : > { %820 = shalt.err (!%p817_p8)
}
 0x2f0   : > { %s875_s8 = smov 64   ;;  %s876_s29 = smov 4   ;;  %vm463_vm3 = vcmask 125952  }
 0x2f1   : > { %669 = dma.vmem_to_hbm [thread:$0]  (%p1003_p12), %s1079_s26, 128, %s1084_s15, %s489_s27, %s875_s8, %s875_s8, %s876_s29  }
 0x2f2   : > { %p293_p10 = scmp.lt.s32.totalorder %s933_s25, 1 }
 0x2f4   : > { %s1161_s25 = smov (!%p293_p10, %s933_s25), 1 }
 0x2f5   : > { %s644_s19 = sshll.u32 %s1161_s25, 4 }
 0x2f6   : > { %s297_s20 = scalar_lea.vmem %s1138_s5, %s644_s19 }
 0x319   : > { %v431_v45 = vpop.trf.xlu1 }
 0x31a   : > { %v645_v46 = vpack.c.bf16 %v431_v45, %v431_v45 }
 0x31c   : > { %464 = vst.msk [vmem:[%s297_s20] sm:$0xf] %vm463_vm3, %v645_v46 }
 0x31d   : > { %v432_v47 = vpop.trf.xlu1 }
 0x31e   : > { %v646_v48 = vpack.c.bf16 %v432_v47, %v432_v47 }
 0x320   : > { %465 = vst.msk [vmem:[%s297_s20 + $0x4] sm:$0xf] %vm463_vm3, %v646_v48 }
 0x321   : > { %v433_v49 = vpop.trf.xlu1 }
 0x322   : > { %v647_v50 = vpack.c.bf16 %v433_v49, %v433_v49 }
 0x324   : > { %466 = vst.msk [vmem:[%s297_s20 + $0x8] sm:$0xf] %vm463_vm3, %v647_v50 }
 0x325   : > { %v434_v51 = vpop.trf.xlu1 }
 0x326   : > { %v648_v52 = vpack.c.bf16 %v434_v51, %v434_v51 }
 0x328   : > { %467 = vst.msk [vmem:[%s297_s20 + $0xc] sm:$0xf] %vm463_vm3, %v648_v52 }
 0x329 PF: > { %s528_s25 = sand.u32 1, %s851_s21   ;;  %p1154_p12 = scmp.ne.s32.totalorder %s1144_s28, 0 }
 0x32a   : > { %p1155_p13 = scmp.ge.s32.totalorder %s863_s24, 2  ;;  %s529_s14 = scalar_lea.sflag [#allocation4], %s528_s25 }
 0x32c   : > { %p680_p3 = pnand %p1155_p13, %p1154_p12 }
 0x32e   : > { %846 = dma.done.wait (!%p680_p3), %s529_s14, 128  }
 0x32f   : > { %848 = vsyncadd (!%p680_p3), %s529_s14, 4294967168  ;;  %p21_p7 = scmp.ge.s32.totalorder %s968_s9, 4   ;;  %s1156_s21 = smov %s855_s22 }
 0x330   : > { %s1157_s22 = smov %s859_s23  ;;  %s1158_s23 = smov %s999_s13 }
 0x331   : > { %s1159_s24 = smov %s968_s9  ;;  %23 = sbr.rel (!%p21_p7) target bundleno = 6 (0x6), region = 101 }
 0x338   :  { %534 = vsyncpa [#allocation3], 1 }
 0x339   :  { %536 = vsyncpa [#allocation3 + $0x1], 1 }
 0x33a   :  { %537 = vsyncpa [#allocation6], 1 }
 0x33b   :  { %538 = vsyncpa [#allocation4], 1 }
 0x33c   :  { %540 = vsyncpa [#allocation4 + $0x1], 1 }

</bundles_post_ra>
